<compile_context>
chip_gen: v7x
topology: tpu7x:2x2x1
jax: 0.10.0
libtpu: 0.0.40
codegen_flags: <defaults>
</compile_context>

<pallas_src>
import functools
import math

import jax
import jax.numpy as jnp
import numpy as np
from jax.experimental import pallas as pl
from jax.experimental.pallas import tpu as pltpu

NEG_INFTY = -1.0e9
EPS = 1e-6


def _layer_norm(x, bias, scale):
    # x: (N, H) f32; bias/scale: (1, H) f32
    mean = jnp.mean(x, axis=-1, keepdims=True)
    var = jnp.mean(jnp.square(x - mean), axis=-1, keepdims=True)
    return (x - mean) * jax.lax.rsqrt(var + EPS) * scale + bias


# ------------------------------ fused kernel ------------------------------- #

def gpt_fused_kernel(tok_ref, wlin_ref, pos_ref, mask_ref, pqkv_ref, pch_ref,
                     pff1_ref, pff2_ref, bff1_ref, bff2_ref,
                     b1_ref, s1_ref, b2_ref, s2_ref,
                     ob_ref, os_ref, pdec_ref, out_ref,
                     *, n_layers, n_heads):
    BS = tok_ref.shape[0]                 # flattened batch*step rows
    H = wlin_ref.shape[1]
    dh = pqkv_ref.shape[3]
    nh = n_heads
    scale_q = 1.0 / math.sqrt(dh)
    bf16 = jnp.bfloat16
    f32 = jnp.float32

    # embedding projection: (BS, E) @ (E, H) -> (BS, H), f32 accumulate
    x_emb = jnp.dot(tok_ref[...], wlin_ref[...], preferred_element_type=f32)
    mask = mask_ref[...]                  # (BS, BS) block-diag causal, f32

    # NOTE: faithful to the reference — `layer_input` is never updated across
    # layers, so every layer reads x_emb; only the last x_ffw_norm is used.
    x_ffw_norm = x_emb
    for m in range(n_layers):             # unrolled (n_layers is static)
        layer_in = pos_ref[m] + x_emb                              # (BS,H) f32
        lin_b = jnp.broadcast_to(layer_in.astype(bf16)[None],
                                 (3 * nh, BS, H))                  # (3nh,BS,H)

        # fused Q/K/V projection; head axis is the leading batch dim
        qkv = jnp.einsum('hnd,hdf->hnf', lin_b, pqkv_ref[m],
                         preferred_element_type=f32)               # (3nh,BS,dh)
        q = qkv[:nh] * scale_q
        k = qkv[nh:2 * nh]
        v = qkv[2 * nh:]

        # attention over flattened rows with block-diagonal causal mask
        sc = jnp.einsum('hqd,hkd->hqk', q.astype(bf16), k.astype(bf16),
                        preferred_element_type=f32)                # (nh,BS,BS)
        sc = sc + mask
        sc = sc - jnp.max(sc, axis=-1, keepdims=True)
        e = jnp.exp(sc)
        al = e * pl.reciprocal(jnp.sum(e, axis=-1, keepdims=True), approx=True)
        ctx = jnp.einsum('hqk,hkd->hqd', al.astype(bf16), v.astype(bf16),
                         preferred_element_type=f32)               # (nh,BS,dh)

        # combine_heads + output projection == per-head matmul + sum over heads
        xm_h = jnp.einsum('hqd,hdo->hqo', ctx.astype(bf16), pch_ref[m],
                          preferred_element_type=f32)              # (nh,BS,H)
        x_multi = xm_h[0]
        for h in range(1, nh):
            x_multi = x_multi + xm_h[h]                            # (BS,H)

        # var_type == 'norm_add'
        x_self_norm = layer_in + _layer_norm(x_multi, b1_ref[m], s1_ref[m])

        ffw1 = jnp.maximum(
            bff1_ref[m] + jnp.dot(x_self_norm.astype(bf16), pff1_ref[m],
                                  preferred_element_type=f32), 0.0)
        ffw2 = bff2_ref[m] + jnp.dot(ffw1.astype(bf16), pff2_ref[m],
                                     preferred_element_type=f32)
        x_ffw_norm = x_self_norm + _layer_norm(ffw2, b2_ref[m], s2_ref[m])

    # output: norm_add + (lane-padded) decoder projection, lane-dense store
    dec = x_emb + _layer_norm(x_ffw_norm, ob_ref[...], os_ref[...])
    out_ref[...] = jnp.dot(dec.astype(bf16), pdec_ref[...],
                           preferred_element_type=f32)


# -------------------------------- wrapper ---------------------------------- #

def gpt_forward_pallas(params, x_tokens, *, n_layers, n_heads):
    B, step = x_tokens.shape
    E = params['emb_decode'].shape[1]
    H = params['W_dec_lin'].shape[1]
    F = params['p_d_ff1'].shape[2]
    V = params['p_decoder'].shape[1]
    L = n_layers
    dh = H // n_heads
    BS = B * step
    Vp = ((V + 127) // 128) * 128         # lane-dense logits store

    f32, bf16 = jnp.float32, jnp.bfloat16

    # ---- wrapper-side glue (gather, static reshapes, casts; no heavy compute)
    tok = params['emb_decode'][x_tokens].reshape(BS, E).astype(bf16)
    wlin = params['W_dec_lin'].astype(bf16)

    # positional embedding tiled over the batch rows: row b*step+s -> pos[s]
    pos = jnp.tile(params['x_emb_pos_dec'][:, :step, :], (1, B, 1)).astype(f32)

    # block-diagonal causal mask over the flattened (batch*step) rows
    r = jnp.arange(BS)
    same_batch = (r[:, None] // step) == (r[None, :] // step)
    causal = (r[None, :] % step) <= (r[:, None] % step)
    mask = jnp.where(same_batch & causal, 0.0, NEG_INFTY).astype(f32)

    # per-head weight splits (head h owns output cols / input rows h*dh:(h+1)*dh)
    def split_cols(w):                                  # (L,H,H) -> (L,nh,H,dh)
        return w.reshape(L, H, n_heads, dh).transpose(0, 2, 1, 3)

    pqkv = jnp.concatenate([split_cols(params['p_d_q']),
                            split_cols(params['p_d_k']),
                            split_cols(params['p_d_v'])], axis=1).astype(bf16)
    pch = params['p_d_c'].reshape(L, n_heads, dh, H).astype(bf16)   # (L,nh,dh,H)

    pff1 = params['p_d_ff1'].astype(bf16)
    pff2 = params['p_d_ff2'].astype(bf16)
    bff1 = params['b_d_ff1'].reshape(L, 1, F).astype(f32)
    bff2 = params['b_d_ff2'].reshape(L, 1, H).astype(f32)
    b1 = params['b_d_bias_1'].reshape(L, 1, H).astype(f32)
    s1 = params['b_d_scale_1'].reshape(L, 1, H).astype(f32)
    b2 = params['b_d_bias_2'].reshape(L, 1, H).astype(f32)
    s2 = params['b_d_scale_2'].reshape(L, 1, H).astype(f32)
    ob = params['d_o_bias'].reshape(1, H).astype(f32)
    os_ = params['d_o_scale'].reshape(1, H).astype(f32)
    pdec = jnp.pad(params['p_decoder'], ((0, 0), (0, Vp - V))).astype(bf16)

    vmem = pl.BlockSpec(memory_space=pltpu.MemorySpace.VMEM)
    logits_pad = pl.pallas_call(
        functools.partial(gpt_fused_kernel, n_layers=n_layers, n_heads=n_heads),
        out_shape=jax.ShapeDtypeStruct((BS, Vp), f32),
        in_specs=[vmem] * 17,
        out_specs=vmem,
    )(tok, wlin, pos, mask, pqkv, pch, pff1, pff2,
      bff1, bff2, b1, s1, b2, s2, ob, os_, pdec)

    return logits_pad[:, :V].reshape(B, step, V)


# --------------------------- pure-JAX reference ---------------------------- #

def gpt_forward_ref(params, x_tokens, *, n_layers, n_heads):
    B, S = x_tokens.shape
    H = params['W_dec_lin'].shape[1]
    dh = H // n_heads
    x_emb = params['emb_decode'][x_tokens] @ params['W_dec_lin']
    mask = jnp.where(jnp.triu(jnp.ones((S, S), jnp.float32), 1) > 0, NEG_INFTY, 0.0)

    def ln(x, b, s):
        m = jnp.mean(x, -1, keepdims=True)
        v = jnp.mean(jnp.square(x - m), -1, keepdims=True)
        return (x - m) * jax.lax.rsqrt(v + EPS) * s + b

    def split(t):
        return t.reshape(B, S, n_heads, dh).transpose(0, 2, 1, 3)

    xfn = None
    for m in range(n_layers):
        layer_in = params['x_emb_pos_dec'][m, :S, :] + x_emb
        q = split(layer_in @ params['p_d_q'][m]) * jax.lax.rsqrt(jnp.float32(dh))
        k = split(layer_in @ params['p_d_k'][m])
        v = split(layer_in @ params['p_d_v'][m])
        sc = jnp.einsum('bhqd,bhkd->bhqk', q, k) + mask
        al = jax.nn.softmax(sc, axis=-1)
        o = jnp.einsum('bhqk,bhkd->bhqd', al, v).transpose(0, 2, 1, 3).reshape(B, S, H)
        xm = o @ params['p_d_c'][m]
        xsn = layer_in + ln(xm, params['b_d_bias_1'][m], params['b_d_scale_1'][m])
        f1 = jax.nn.relu(params['b_d_ff1'][m] + xsn @ params['p_d_ff1'][m])
        f2 = params['b_d_ff2'][m] + f1 @ params['p_d_ff2'][m]
        xfn = xsn + ln(f2, params['b_d_bias_2'][m], params['b_d_scale_2'][m])

    dec = x_emb + ln(xfn, params['d_o_bias'], params['d_o_scale'])
    return dec @ params['p_decoder']


# ---------------------------------- main ----------------------------------- #

if __name__ == "__main__":
    # small GPT config consistent with the module
    n_layers, n_heads = 2, 4
    hidden_size, ffwd_size = 32, 64
    vocab_size, seq_length, embed_size = 50, 16, 128
    batch, step = 2, 8   # step <= seq_length

    key = jax.random.PRNGKey(0)
    ks = jax.random.split(key, 12)
    f32 = jnp.float32
    params = {
        'emb_decode':    0.1 * jax.random.normal(ks[0], (vocab_size, embed_size), f32),
        'W_dec_lin':     0.1 * jax.random.normal(ks[1], (embed_size, hidden_size), f32),
        'p_decoder':     0.1 * jax.random.normal(ks[2], (hidden_size, vocab_size), f32),
        'x_emb_pos_dec': 0.1 * jax.random.normal(ks[3], (n_layers, seq_length, hidden_size), f32),
        'p_d_q':         0.1 * jax.random.normal(ks[4], (n_layers, hidden_size, hidden_size), f32),
        'p_d_k':         0.1 * jax.random.normal(ks[5], (n_layers, hidden_size, hidden_size), f32),
        'p_d_v':         0.1 * jax.random.normal(ks[6], (n_layers, hidden_size, hidden_size), f32),
        'p_d_c':         0.1 * jax.random.normal(ks[7], (n_layers, hidden_size, hidden_size), f32),
        'p_d_ff1':       0.1 * jax.random.normal(ks[8], (n_layers, hidden_size, ffwd_size), f32),
        'p_d_ff2':       0.1 * jax.random.normal(ks[9], (n_layers, ffwd_size, hidden_size), f32),
        'b_d_ff1':       jnp.zeros((n_layers, ffwd_size), f32),
        'b_d_ff2':       jnp.zeros((n_layers, hidden_size), f32),
        'd_o_bias':      jnp.zeros((hidden_size,), f32),
        'd_o_scale':     jnp.ones((hidden_size,), f32),
        'b_d_bias_1':    jnp.zeros((n_layers, hidden_size), f32),
        'b_d_bias_2':    jnp.zeros((n_layers, hidden_size), f32),
        'b_d_scale_1':   jnp.ones((n_layers, hidden_size), f32),
        'b_d_scale_2':   jnp.ones((n_layers, hidden_size), f32),
    }

    x_tokens = jax.random.randint(ks[10], (batch, step), 0, vocab_size, jnp.int32)

    fwd = jax.jit(functools.partial(gpt_forward_pallas,
                                    n_layers=n_layers, n_heads=n_heads))
    logits = fwd(params, x_tokens)
    logits = jax.block_until_ready(logits)

    ref = gpt_forward_ref(params, x_tokens, n_layers=n_layers, n_heads=n_heads)
    np.testing.assert_allclose(np.asarray(logits), np.asarray(ref),
                               rtol=5e-2, atol=5e-2)

    print("KERNEL_OK")
</pallas_src>

<mosaic_0001>
module attributes {stable_mosaic.version = 11 : i64} {
  func.func @gpt_fused_kernel(%arg0: memref<16x128xbf16, #tpu.memory_space<vmem>>, %arg1: memref<128x32xbf16, #tpu.memory_space<vmem>>, %arg2: memref<2x16x32xf32, #tpu.memory_space<vmem>>, %arg3: memref<16x16xf32, #tpu.memory_space<vmem>>, %arg4: memref<2x12x32x8xbf16, #tpu.memory_space<vmem>>, %arg5: memref<2x4x8x32xbf16, #tpu.memory_space<vmem>>, %arg6: memref<2x32x64xbf16, #tpu.memory_space<vmem>>, %arg7: memref<2x64x32xbf16, #tpu.memory_space<vmem>>, %arg8: memref<2x1x64xf32, #tpu.memory_space<vmem>>, %arg9: memref<2x1x32xf32, #tpu.memory_space<vmem>>, %arg10: memref<2x1x32xf32, #tpu.memory_space<vmem>>, %arg11: memref<2x1x32xf32, #tpu.memory_space<vmem>>, %arg12: memref<2x1x32xf32, #tpu.memory_space<vmem>>, %arg13: memref<2x1x32xf32, #tpu.memory_space<vmem>>, %arg14: memref<1x32xf32, #tpu.memory_space<vmem>>, %arg15: memref<1x32xf32, #tpu.memory_space<vmem>>, %arg16: memref<32x128xbf16, #tpu.memory_space<vmem>>, %arg17: memref<16x128xf32, #tpu.memory_space<vmem>>) attributes {dimension_semantics = [], scalar_prefetch = 0 : i64, scratch_operands = 0 : i64, tpu.core_type = #tpu.core_type<tc>} {
    %c0 = arith.constant 0 : index
    %c0_0 = arith.constant 0 : index
    %0 = vector.load %arg0[%c0, %c0_0] : memref<16x128xbf16, #tpu.memory_space<vmem>>, vector<16x128xbf16>
    %c0_1 = arith.constant 0 : index
    %c0_2 = arith.constant 0 : index
    %1 = vector.load %arg1[%c0_1, %c0_2] : memref<128x32xbf16, #tpu.memory_space<vmem>>, vector<128x32xbf16>
    %cst = arith.constant dense<0.000000e+00> : vector<16x32xf32>
    %2 = tpu.matmul %0, %1, %cst {dimension_numbers = #tpu.dot_dimension_numbers<[1], [0], [0], [1], [0, 0, 1, 1], [], []>} : vector<16x128xbf16>, vector<128x32xbf16>, vector<16x32xf32> -> vector<16x32xf32>
    %c0_3 = arith.constant 0 : index
    %c0_4 = arith.constant 0 : index
    %3 = vector.load %arg3[%c0_3, %c0_4] : memref<16x16xf32, #tpu.memory_space<vmem>>, vector<16x16xf32>
    %c1 = arith.constant 1 : index
    %c0_5 = arith.constant 0 : index
    %c0_6 = arith.constant 0 : index
    %4 = vector.load %arg2[%c1, %c0_5, %c0_6] : memref<2x16x32xf32, #tpu.memory_space<vmem>>, vector<1x16x32xf32>
    %5 = vector.shape_cast %4 : vector<1x16x32xf32> to vector<16x32xf32>
    %6 = arith.addf %5, %2 : vector<16x32xf32>
    %7 = arith.truncf %6 : vector<16x32xf32> to vector<16x32xbf16>
    %8 = vector.shape_cast %7 : vector<16x32xbf16> to vector<1x16x32xbf16>
    %9 = vector.shape_cast %8 : vector<1x16x32xbf16> to vector<1x16x32xbf16>
    %10 = vector.broadcast %9 : vector<1x16x32xbf16> to vector<12x16x32xbf16>
    %c1_7 = arith.constant 1 : index
    %c0_8 = arith.constant 0 : index
    %c0_9 = arith.constant 0 : index
    %c0_10 = arith.constant 0 : index
    %11 = vector.load %arg4[%c1_7, %c0_8, %c0_9, %c0_10] : memref<2x12x32x8xbf16, #tpu.memory_space<vmem>>, vector<1x12x32x8xbf16>
    %12 = vector.shape_cast %11 : vector<1x12x32x8xbf16> to vector<12x32x8xbf16>
    "tpu.trace_start"() <{level = 10 : i32, message = "hnd,hdf->hnf"}> : () -> ()
    %cst_11 = arith.constant dense<0.000000e+00> : vector<12x16x8xf32>
    %13 = tpu.matmul %10, %12, %cst_11 {dimension_numbers = #tpu.dot_dimension_numbers<[2], [1], [1], [2], [0, 0, 0, 1, 1, 2], [0], [0]>} : vector<12x16x32xbf16>, vector<12x32x8xbf16>, vector<12x16x8xf32> -> vector<12x16x8xf32>
    "tpu.trace_stop"() : () -> ()
    %14 = vector.extract_strided_slice %13 {offsets = [0, 0, 0], sizes = [4, 16, 8], strides = [1, 1, 1]} : vector<12x16x8xf32> to vector<4x16x8xf32>
    %cst_12 = arith.constant 0.353553385 : f32
    %15 = vector.broadcast %cst_12 : f32 to vector<4x16x8xf32>
    %16 = arith.mulf %14, %15 : vector<4x16x8xf32>
    %17 = vector.extract_strided_slice %13 {offsets = [4, 0, 0], sizes = [4, 16, 8], strides = [1, 1, 1]} : vector<12x16x8xf32> to vector<4x16x8xf32>
    %18 = vector.extract_strided_slice %13 {offsets = [8, 0, 0], sizes = [4, 16, 8], strides = [1, 1, 1]} : vector<12x16x8xf32> to vector<4x16x8xf32>
    %19 = arith.truncf %16 : vector<4x16x8xf32> to vector<4x16x8xbf16>
    %20 = arith.truncf %17 : vector<4x16x8xf32> to vector<4x16x8xbf16>
    "tpu.trace_start"() <{level = 10 : i32, message = "hqd,hkd->hqk"}> : () -> ()
    %cst_13 = arith.constant dense<0.000000e+00> : vector<4x16x16xf32>
    %21 = tpu.matmul %19, %20, %cst_13 {dimension_numbers = #tpu.dot_dimension_numbers<[2], [2], [1], [1], [0, 0, 0, 1, 1, 1], [0], [0]>} : vector<4x16x8xbf16>, vector<4x16x8xbf16>, vector<4x16x16xf32> -> vector<4x16x16xf32>
    "tpu.trace_stop"() : () -> ()
    %22 = vector.shape_cast %3 : vector<16x16xf32> to vector<1x16x16xf32>
    %23 = vector.broadcast %22 : vector<1x16x16xf32> to vector<4x16x16xf32>
    %24 = arith.addf %21, %23 : vector<4x16x16xf32>
    %cst_14 = arith.constant dense<0xFF800000> : vector<4x16xf32>
    %25 = vector.multi_reduction <maximumf>, %24, %cst_14 [2] : vector<4x16x16xf32> to vector<4x16xf32>
    %26 = vector.shape_cast %25 : vector<4x16xf32> to vector<4x16x1xf32>
    %27 = vector.broadcast %26 : vector<4x16x1xf32> to vector<4x16x16xf32>
    %28 = arith.subf %24, %27 : vector<4x16x16xf32>
    %29 = math.exp %28 : vector<4x16x16xf32>
    %cst_15 = arith.constant dense<0.000000e+00> : vector<4x16xf32>
    %30 = vector.multi_reduction <add>, %29, %cst_15 [2] : vector<4x16x16xf32> to vector<4x16xf32>
    %31 = vector.shape_cast %30 : vector<4x16xf32> to vector<4x16x1xf32>
    %32 = tpu.reciprocal %31 {approx = true} : vector<4x16x1xf32> -> vector<4x16x1xf32>
    %33 = vector.broadcast %32 : vector<4x16x1xf32> to vector<4x16x16xf32>
    %34 = arith.mulf %29, %33 : vector<4x16x16xf32>
    %35 = arith.truncf %34 : vector<4x16x16xf32> to vector<4x16x16xbf16>
    %36 = arith.truncf %18 : vector<4x16x8xf32> to vector<4x16x8xbf16>
    "tpu.trace_start"() <{level = 10 : i32, message = "hqk,hkd->hqd"}> : () -> ()
    %cst_16 = arith.constant dense<0.000000e+00> : vector<4x16x8xf32>
    %37 = tpu.matmul %35, %36, %cst_16 {dimension_numbers = #tpu.dot_dimension_numbers<[2], [1], [1], [2], [0, 0, 0, 1, 1, 2], [0], [0]>} : vector<4x16x16xbf16>, vector<4x16x8xbf16>, vector<4x16x8xf32> -> vector<4x16x8xf32>
    "tpu.trace_stop"() : () -> ()
    %38 = arith.truncf %37 : vector<4x16x8xf32> to vector<4x16x8xbf16>
    %c1_17 = arith.constant 1 : index
    %c0_18 = arith.constant 0 : index
    %c0_19 = arith.constant 0 : index
    %c0_20 = arith.constant 0 : index
    %39 = vector.load %arg5[%c1_17, %c0_18, %c0_19, %c0_20] : memref<2x4x8x32xbf16, #tpu.memory_space<vmem>>, vector<1x4x8x32xbf16>
    %40 = vector.shape_cast %39 : vector<1x4x8x32xbf16> to vector<4x8x32xbf16>
    "tpu.trace_start"() <{level = 10 : i32, message = "hqd,hdo->hqo"}> : () -> ()
    %cst_21 = arith.constant dense<0.000000e+00> : vector<4x16x32xf32>
    %41 = tpu.matmul %38, %40, %cst_21 {dimension_numbers = #tpu.dot_dimension_numbers<[2], [1], [1], [2], [0, 0, 0, 1, 1, 2], [0], [0]>} : vector<4x16x8xbf16>, vector<4x8x32xbf16>, vector<4x16x32xf32> -> vector<4x16x32xf32>
    "tpu.trace_stop"() : () -> ()
    %42 = vector.extract_strided_slice %41 {offsets = [0, 0, 0], sizes = [1, 16, 32], strides = [1, 1, 1]} : vector<4x16x32xf32> to vector<1x16x32xf32>
    %43 = vector.shape_cast %42 : vector<1x16x32xf32> to vector<16x32xf32>
    %44 = vector.extract_strided_slice %41 {offsets = [1, 0, 0], sizes = [1, 16, 32], strides = [1, 1, 1]} : vector<4x16x32xf32> to vector<1x16x32xf32>
    %45 = vector.shape_cast %44 : vector<1x16x32xf32> to vector<16x32xf32>
    %46 = arith.addf %43, %45 : vector<16x32xf32>
    %47 = vector.extract_strided_slice %41 {offsets = [2, 0, 0], sizes = [1, 16, 32], strides = [1, 1, 1]} : vector<4x16x32xf32> to vector<1x16x32xf32>
    %48 = vector.shape_cast %47 : vector<1x16x32xf32> to vector<16x32xf32>
    %49 = arith.addf %46, %48 : vector<16x32xf32>
    %50 = vector.extract_strided_slice %41 {offsets = [3, 0, 0], sizes = [1, 16, 32], strides = [1, 1, 1]} : vector<4x16x32xf32> to vector<1x16x32xf32>
    %51 = vector.shape_cast %50 : vector<1x16x32xf32> to vector<16x32xf32>
    %52 = arith.addf %49, %51 : vector<16x32xf32>
    %c1_22 = arith.constant 1 : index
    %c0_23 = arith.constant 0 : index
    %c0_24 = arith.constant 0 : index
    %53 = vector.load %arg10[%c1_22, %c0_23, %c0_24] : memref<2x1x32xf32, #tpu.memory_space<vmem>>, vector<1x1x32xf32>
    %54 = vector.shape_cast %53 : vector<1x1x32xf32> to vector<1x32xf32>
    %c1_25 = arith.constant 1 : index
    %c0_26 = arith.constant 0 : index
    %c0_27 = arith.constant 0 : index
    %55 = vector.load %arg11[%c1_25, %c0_26, %c0_27] : memref<2x1x32xf32, #tpu.memory_space<vmem>>, vector<1x1x32xf32>
    %56 = vector.shape_cast %55 : vector<1x1x32xf32> to vector<1x32xf32>
    %cst_28 = arith.constant dense<0.000000e+00> : vector<16xf32>
    %57 = vector.multi_reduction <add>, %52, %cst_28 [1] : vector<16x32xf32> to vector<16xf32>
    %58 = vector.shape_cast %57 : vector<16xf32> to vector<16x1xf32>
    %cst_29 = arith.constant 3.200000e+01 : f32
    %59 = vector.broadcast %cst_29 : f32 to vector<16x1xf32>
    %60 = arith.divf %58, %59 : vector<16x1xf32>
    %61 = vector.broadcast %60 : vector<16x1xf32> to vector<16x32xf32>
    %62 = arith.subf %52, %61 : vector<16x32xf32>
    %63 = arith.mulf %62, %62 : vector<16x32xf32>
    %cst_30 = arith.constant dense<0.000000e+00> : vector<16xf32>
    %64 = vector.multi_reduction <add>, %63, %cst_30 [1] : vector<16x32xf32> to vector<16xf32>
    %65 = vector.shape_cast %64 : vector<16xf32> to vector<16x1xf32>
    %cst_31 = arith.constant 3.200000e+01 : f32
    %66 = vector.broadcast %cst_31 : f32 to vector<16x1xf32>
    %67 = arith.divf %65, %66 : vector<16x1xf32>
    %68 = vector.broadcast %60 : vector<16x1xf32> to vector<16x32xf32>
    %69 = arith.subf %52, %68 : vector<16x32xf32>
    %cst_32 = arith.constant 9.99999997E-7 : f32
    %70 = vector.broadcast %cst_32 : f32 to vector<16x1xf32>
    %71 = arith.addf %67, %70 : vector<16x1xf32>
    %72 = math.rsqrt %71 : vector<16x1xf32>
    %73 = vector.broadcast %72 : vector<16x1xf32> to vector<16x32xf32>
    %74 = arith.mulf %69, %73 : vector<16x32xf32>
    %75 = vector.broadcast %56 : vector<1x32xf32> to vector<16x32xf32>
    %76 = arith.mulf %74, %75 : vector<16x32xf32>
    %77 = vector.broadcast %54 : vector<1x32xf32> to vector<16x32xf32>
    %78 = arith.addf %76, %77 : vector<16x32xf32>
    %79 = arith.addf %6, %78 : vector<16x32xf32>
    %c1_33 = arith.constant 1 : index
    %c0_34 = arith.constant 0 : index
    %c0_35 = arith.constant 0 : index
    %80 = vector.load %arg8[%c1_33, %c0_34, %c0_35] : memref<2x1x64xf32, #tpu.memory_space<vmem>>, vector<1x1x64xf32>
    %81 = vector.shape_cast %80 : vector<1x1x64xf32> to vector<1x64xf32>
    %82 = arith.truncf %79 : vector<16x32xf32> to vector<16x32xbf16>
    %c1_36 = arith.constant 1 : index
    %c0_37 = arith.constant 0 : index
    %c0_38 = arith.constant 0 : index
    %83 = vector.load %arg6[%c1_36, %c0_37, %c0_38] : memref<2x32x64xbf16, #tpu.memory_space<vmem>>, vector<1x32x64xbf16>
    %84 = vector.shape_cast %83 : vector<1x32x64xbf16> to vector<32x64xbf16>
    %cst_39 = arith.constant dense<0.000000e+00> : vector<16x64xf32>
    %85 = tpu.matmul %82, %84, %cst_39 {dimension_numbers = #tpu.dot_dimension_numbers<[1], [0], [0], [1], [0, 0, 1, 1], [], []>} : vector<16x32xbf16>, vector<32x64xbf16>, vector<16x64xf32> -> vector<16x64xf32>
    %86 = vector.broadcast %81 : vector<1x64xf32> to vector<16x64xf32>
    %87 = arith.addf %86, %85 : vector<16x64xf32>
    %cst_40 = arith.constant 0.000000e+00 : f32
    %88 = vector.broadcast %cst_40 : f32 to vector<16x64xf32>
    %89 = arith.maximumf %87, %88 : vector<16x64xf32>
    %c1_41 = arith.constant 1 : index
    %c0_42 = arith.constant 0 : index
    %c0_43 = arith.constant 0 : index
    %90 = vector.load %arg9[%c1_41, %c0_42, %c0_43] : memref<2x1x32xf32, #tpu.memory_space<vmem>>, vector<1x1x32xf32>
    %91 = vector.shape_cast %90 : vector<1x1x32xf32> to vector<1x32xf32>
    %92 = arith.truncf %89 : vector<16x64xf32> to vector<16x64xbf16>
    %c1_44 = arith.constant 1 : index
    %c0_45 = arith.constant 0 : index
    %c0_46 = arith.constant 0 : index
    %93 = vector.load %arg7[%c1_44, %c0_45, %c0_46] : memref<2x64x32xbf16, #tpu.memory_space<vmem>>, vector<1x64x32xbf16>
    %94 = vector.shape_cast %93 : vector<1x64x32xbf16> to vector<64x32xbf16>
    %cst_47 = arith.constant dense<0.000000e+00> : vector<16x32xf32>
    %95 = tpu.matmul %92, %94, %cst_47 {dimension_numbers = #tpu.dot_dimension_numbers<[1], [0], [0], [1], [0, 0, 1, 1], [], []>} : vector<16x64xbf16>, vector<64x32xbf16>, vector<16x32xf32> -> vector<16x32xf32>
    %96 = vector.broadcast %91 : vector<1x32xf32> to vector<16x32xf32>
    %97 = arith.addf %96, %95 : vector<16x32xf32>
    %c1_48 = arith.constant 1 : index
    %c0_49 = arith.constant 0 : index
    %c0_50 = arith.constant 0 : index
    %98 = vector.load %arg12[%c1_48, %c0_49, %c0_50] : memref<2x1x32xf32, #tpu.memory_space<vmem>>, vector<1x1x32xf32>
    %99 = vector.shape_cast %98 : vector<1x1x32xf32> to vector<1x32xf32>
    %c1_51 = arith.constant 1 : index
    %c0_52 = arith.constant 0 : index
    %c0_53 = arith.constant 0 : index
    %100 = vector.load %arg13[%c1_51, %c0_52, %c0_53] : memref<2x1x32xf32, #tpu.memory_space<vmem>>, vector<1x1x32xf32>
    %101 = vector.shape_cast %100 : vector<1x1x32xf32> to vector<1x32xf32>
    %cst_54 = arith.constant dense<0.000000e+00> : vector<16xf32>
    %102 = vector.multi_reduction <add>, %97, %cst_54 [1] : vector<16x32xf32> to vector<16xf32>
    %103 = vector.shape_cast %102 : vector<16xf32> to vector<16x1xf32>
    %cst_55 = arith.constant 3.200000e+01 : f32
    %104 = vector.broadcast %cst_55 : f32 to vector<16x1xf32>
    %105 = arith.divf %103, %104 : vector<16x1xf32>
    %106 = vector.broadcast %105 : vector<16x1xf32> to vector<16x32xf32>
    %107 = arith.subf %97, %106 : vector<16x32xf32>
    %108 = arith.mulf %107, %107 : vector<16x32xf32>
    %cst_56 = arith.constant dense<0.000000e+00> : vector<16xf32>
    %109 = vector.multi_reduction <add>, %108, %cst_56 [1] : vector<16x32xf32> to vector<16xf32>
    %110 = vector.shape_cast %109 : vector<16xf32> to vector<16x1xf32>
    %cst_57 = arith.constant 3.200000e+01 : f32
    %111 = vector.broadcast %cst_57 : f32 to vector<16x1xf32>
    %112 = arith.divf %110, %111 : vector<16x1xf32>
    %113 = vector.broadcast %105 : vector<16x1xf32> to vector<16x32xf32>
    %114 = arith.subf %97, %113 : vector<16x32xf32>
    %cst_58 = arith.constant 9.99999997E-7 : f32
    %115 = vector.broadcast %cst_58 : f32 to vector<16x1xf32>
    %116 = arith.addf %112, %115 : vector<16x1xf32>
    %117 = math.rsqrt %116 : vector<16x1xf32>
    %118 = vector.broadcast %117 : vector<16x1xf32> to vector<16x32xf32>
    %119 = arith.mulf %114, %118 : vector<16x32xf32>
    %120 = vector.broadcast %101 : vector<1x32xf32> to vector<16x32xf32>
    %121 = arith.mulf %119, %120 : vector<16x32xf32>
    %122 = vector.broadcast %99 : vector<1x32xf32> to vector<16x32xf32>
    %123 = arith.addf %121, %122 : vector<16x32xf32>
    %124 = arith.addf %79, %123 : vector<16x32xf32>
    %c0_59 = arith.constant 0 : index
    %c0_60 = arith.constant 0 : index
    %125 = vector.load %arg14[%c0_59, %c0_60] : memref<1x32xf32, #tpu.memory_space<vmem>>, vector<1x32xf32>
    %c0_61 = arith.constant 0 : index
    %c0_62 = arith.constant 0 : index
    %126 = vector.load %arg15[%c0_61, %c0_62] : memref<1x32xf32, #tpu.memory_space<vmem>>, vector<1x32xf32>
    %cst_63 = arith.constant dense<0.000000e+00> : vector<16xf32>
    %127 = vector.multi_reduction <add>, %124, %cst_63 [1] : vector<16x32xf32> to vector<16xf32>
    %128 = vector.shape_cast %127 : vector<16xf32> to vector<16x1xf32>
    %cst_64 = arith.constant 3.200000e+01 : f32
    %129 = vector.broadcast %cst_64 : f32 to vector<16x1xf32>
    %130 = arith.divf %128, %129 : vector<16x1xf32>
    %131 = vector.broadcast %130 : vector<16x1xf32> to vector<16x32xf32>
    %132 = arith.subf %124, %131 : vector<16x32xf32>
    %133 = arith.mulf %132, %132 : vector<16x32xf32>
    %cst_65 = arith.constant dense<0.000000e+00> : vector<16xf32>
    %134 = vector.multi_reduction <add>, %133, %cst_65 [1] : vector<16x32xf32> to vector<16xf32>
    %135 = vector.shape_cast %134 : vector<16xf32> to vector<16x1xf32>
    %cst_66 = arith.constant 3.200000e+01 : f32
    %136 = vector.broadcast %cst_66 : f32 to vector<16x1xf32>
    %137 = arith.divf %135, %136 : vector<16x1xf32>
    %138 = vector.broadcast %130 : vector<16x1xf32> to vector<16x32xf32>
    %139 = arith.subf %124, %138 : vector<16x32xf32>
    %cst_67 = arith.constant 9.99999997E-7 : f32
    %140 = vector.broadcast %cst_67 : f32 to vector<16x1xf32>
    %141 = arith.addf %137, %140 : vector<16x1xf32>
    %142 = math.rsqrt %141 : vector<16x1xf32>
    %143 = vector.broadcast %142 : vector<16x1xf32> to vector<16x32xf32>
    %144 = arith.mulf %139, %143 : vector<16x32xf32>
    %145 = vector.broadcast %126 : vector<1x32xf32> to vector<16x32xf32>
    %146 = arith.mulf %144, %145 : vector<16x32xf32>
    %147 = vector.broadcast %125 : vector<1x32xf32> to vector<16x32xf32>
    %148 = arith.addf %146, %147 : vector<16x32xf32>
    %149 = arith.addf %2, %148 : vector<16x32xf32>
    %150 = arith.truncf %149 : vector<16x32xf32> to vector<16x32xbf16>
    %c0_68 = arith.constant 0 : index
    %c0_69 = arith.constant 0 : index
    %151 = vector.load %arg16[%c0_68, %c0_69] : memref<32x128xbf16, #tpu.memory_space<vmem>>, vector<32x128xbf16>
    %cst_70 = arith.constant dense<0.000000e+00> : vector<16x128xf32>
    %152 = tpu.matmul %150, %151, %cst_70 {dimension_numbers = #tpu.dot_dimension_numbers<[1], [0], [0], [1], [0, 0, 1, 1], [], []>} : vector<16x32xbf16>, vector<32x128xbf16>, vector<16x128xf32> -> vector<16x128xf32>
    %c0_71 = arith.constant 0 : index
    %c0_72 = arith.constant 0 : index
    %153 = vector.load %arg17[%c0_71, %c0_72] : memref<16x128xf32, #tpu.memory_space<vmem>>, vector<16x128xf32>
    tpu.vector_store %arg17[%c0_71, %c0_72], %152 {strides = array<i32>} : memref<16x128xf32, #tpu.memory_space<vmem>>, vector<16x128xf32>,
    return
  }
}

</mosaic_0001>

<bundles_post_ra>
// kernel: gpt_forward_pallas.1
= control target key start
LH: loop header
LB: loop body
LE: loop exit
PB: predicated region body
PF: predicated region fallthrough
CT: control target
= control target key end

     0   :  { %v2465_v0 = vmov 0.0   ;;  %vm2466_vm0 = vmmov 0   ;;  %vm239_vm1 = vcmask 261120   ;;  %vm883_vm2 = vcmask 64512   ;;  %s2956_s1 = inlined_call_operand.vmem [shape: bf16[128,32], index: 1, kind: input, shape index: {}]   ;;  %s2957_s0 = inlined_call_operand.vmem [shape: bf16[16,128], index: 0, kind: input, shape index: {}]   ;;  %s2958_s4 = inlined_call_operand.vmem [shape: bf16[2,12,32,8], index: 4, kind: input, shape index: {}]   ;;  %s2959_s2 = inlined_call_operand.vmem [shape: f32[2,16,32], index: 2, kind: input, shape index: {}]   ;;  %s2960_s3 = inlined_call_operand.vmem [shape: f32[16,16], index: 3, kind: input, shape index: {}]   ;;  %s2961_s5 = inlined_call_operand.vmem [shape: bf16[2,4,8,32], index: 5, kind: input, shape index: {}]   ;;  %s2962_s6 = inlined_call_operand.vmem [shape: bf16[2,32,64], index: 6, kind: input, shape index: {}]   ;;  %s2963_s7 = inlined_call_operand.vmem [shape: bf16[2,64,32], index: 7, kind: input, shape index: {}]   ;;  %s2964_s11 = inlined_call_operand.vmem [shape: f32[2,1,32], index: 11, kind: input, shape index: {}]   ;;  %s2965_s10 = inlined_call_operand.vmem [shape: f32[2,1,32], index: 10, kind: input, shape index: {}]   ;;  %s2966_s8 = inlined_call_operand.vmem [shape: f32[2,1,64], index: 8, kind: input, shape index: {}]   ;;  %s2967_s9 = inlined_call_operand.vmem [shape: f32[2,1,32], index: 9, kind: input, shape index: {}]   ;;  %s2968_s13 = inlined_call_operand.vmem [shape: f32[2,1,32], index: 13, kind: input, shape index: {}]   ;;  %s2969_s12 = inlined_call_operand.vmem [shape: f32[2,1,32], index: 12, kind: input, shape index: {}]   ;;  %s2970_s16 = inlined_call_operand.vmem [shape: bf16[32,128], index: 16, kind: input, shape index: {}]   ;;  %s2971_s15 = inlined_call_operand.vmem [shape: f32[1,32], index: 15, kind: input, shape index: {}]   ;;  %s2972_s14 = inlined_call_operand.vmem [shape: f32[1,32], index: 14, kind: input, shape index: {}]   ;;  %s2973_s17 = inlined_call_operand.vmem [shape: f32[16,128], index: 17, kind: output, shape index: {}]  }
   0x1   :  { %2975 = sst [smem:[#allocation2_spill]] %s2956_s1  ;;  %2150 = vmatprep.subr.bf16.mxu0 %v2465_v0  ;;  %2166 = vmatprep.mubr.msk.bf16.mxu0 %vm2466_vm0, %v2465_v0  ;;  %v2389_v10 = vld [vmem:[%s2958_s4 + $0xc0] sm:$0xff]   ;;  %v2391_v12 = vld [vmem:[%s2958_s4 + $0xc8] sm:$0xff]   ;;  %v1931_v15 = vld [vmem:[%s2959_s2 + $0x10] sm:$0xff]  ;;  %vm1072_vm3 = vcmask 130048   ;;  %vm1357_vm4 = vcmask 1043456  }
   0x2   :  { %2976 = sst [smem:[#allocation3_spill]] %s2957_s0  ;;  %s2977_s26 = sld [smem:[#allocation2_spill]]  ;;  %2170 = vmatprep.subr.bf16.mxu1 %v2465_v0  ;;  %2174 = vmatprep.mubr.msk.bf16.mxu1 %vm2466_vm0, %v2465_v0  ;;  %v2390_v11 = vld [vmem:[%s2958_s4 + $0x100] sm:$0xff]   ;;  %v2392_v13 = vld [vmem:[%s2958_s4 + $0x108] sm:$0xff]   ;;  %v1932_v16 = vld [vmem:[%s2959_s2 + $0x18] sm:$0xff]  ;;  %vm1708_vm5 = vcmask 523264  }
   0x3   :  { %s2978_s29 = sld [smem:[#allocation3_spill]]  ;;  %2171 = vmatpush3.bf16.msra.mxu1 %v2389_v10  ;;  %v2393_v22 = vld [vmem:[%s2958_s4 + $0xd0] sm:$0xff]   ;;  %v2394_v23 = vld [vmem:[%s2958_s4 + $0x120] sm:$0xff]   ;;  %v2395_v25 = vld [vmem:[%s2958_s4 + $0xd8] sm:$0xff]  }
   0x4   :  { %2172 = vmatprep.subr.bf16.mxu1 %v2465_v0  ;;  %v2396_v26 = vld [vmem:[%s2958_s4 + $0x128] sm:$0xff]   ;;  %v2397_v27 = vld [vmem:[%s2958_s4 + $0xe0] sm:$0xff]   ;;  %v2401_v31 = vld [vmem:[%s2958_s4 + $0xf0] sm:$0xff]  }
   0x5   :  { %v2398_v28 = vld [vmem:[%s2958_s4 + $0x140] sm:$0xff]   ;;  %v2399_v29 = vld [vmem:[%s2958_s4 + $0xe8] sm:$0xff]   ;;  %v2403_v33 = vld [vmem:[%s2958_s4 + $0xf8] sm:$0xff]  }
   0x6   :  { %v2400_v30 = vld [vmem:[%s2958_s4 + $0x148] sm:$0xff]   ;;  %v2402_v32 = vld [vmem:[%s2958_s4 + $0x160] sm:$0xff]   ;;  %v2405_v35 = vld [vmem:[%s2958_s4 + $0x110] sm:$0xff]  }
   0x7   :  { %2173 = vmatpush3.bf16.msra.mxu1 %v2391_v12  ;;  %v2404_v34 = vld [vmem:[%s2958_s4 + $0x168] sm:$0xff]   ;;  %v2406_v36 = vld [vmem:[%s2958_s4 + $0x118] sm:$0xff]   ;;  %v2407_v37 = vld [vmem:[%s2958_s4 + $0x130] sm:$0xff]  }
   0x8   :  { %v2380_v1 = vld [vmem:[%s2977_s26] sm:$0xff]   ;;  %v2381_v2 = vld [vmem:[%s2977_s26 + $0x8] sm:$0xff]   ;;  %v2382_v3 = vld [vmem:[%s2977_s26 + $0x10] sm:$0xff]   ;;  %2178 = vmatprep.subr.bf16.mxu1 %v2465_v0 }
   0x9   :  { %2151 = vmatpush3.bf16.msra.mxu0 %v2380_v1  ;;  %v2383_v4 = vld [vmem:[%s2977_s26 + $0x18] sm:$0xff]   ;;  %v2384_v5 = vld [vmem:[%s2977_s26 + $0x20] sm:$0xff]   ;;  %v2385_v6 = vld [vmem:[%s2977_s26 + $0x28] sm:$0xff]  }
   0xa   :  { %2152 = vmatprep.subr.bf16.mxu0 %v2465_v0  ;;  %v2386_v7 = vld [vmem:[%s2977_s26 + $0x30] sm:$0xff]   ;;  %v2387_v8 = vld [vmem:[%s2977_s26 + $0x38] sm:$0xff]   ;;  %v2388_v9 = vld [vmem:[%s2978_s29] sm:$0xff]  }
   0xb   :  { %v2408_v38 = vld [vmem:[%s2958_s4 + $0x138] sm:$0xff]   ;;  %v2409_v39 = vld [vmem:[%s2958_s4 + $0x150] sm:$0xff]  }
   0xc   :  { %v2410_v40 = vld [vmem:[%s2958_s4 + $0x158] sm:$0xff]   ;;  %v2411_v41 = vld [vmem:[%s2958_s4 + $0x170] sm:$0xff]  }
   0xd   :  { %2153 = vmatpush3.bf16.msra.mxu0 %v2381_v2  ;;  %v2412_v42 = vld [vmem:[%s2958_s4 + $0x178] sm:$0xff]  }
   0xe   :  { %2154 = vmatprep.subr.bf16.mxu0 %v2465_v0 }
  0x11   :  { %2155 = vmatpush3.bf16.msra.mxu0 %v2382_v3 }
  0x12   :  { %2156 = vmatprep.subr.bf16.mxu0 %v2465_v0 }
  0x15   :  { %2157 = vmatpush3.bf16.msra.mxu0 %v2383_v4 }
  0x16   :  { %2158 = vmatprep.subr.bf16.mxu0 %v2465_v0 }
  0x19   :  { %2159 = vmatpush3.bf16.msra.mxu0 %v2384_v5 }
  0x1a   :  { %2160 = vmatprep.subr.bf16.mxu0 %v2465_v0 }
  0x1d   :  { %2161 = vmatpush3.bf16.msra.mxu0 %v2385_v6 }
  0x1e   :  { %2162 = vmatprep.subr.bf16.mxu0 %v2465_v0 }
  0x21   :  { %2163 = vmatpush3.bf16.msra.mxu0 %v2386_v7 }
  0x22   :  { %2164 = vmatprep.subr.bf16.mxu0 %v2465_v0 }
  0x25   :  { %2165 = vmatpush3.bf16.msra.mxu0 %v2387_v8 }
  0x26   :  { %2202 = vmatprep.subr.bf16.mxu0 %v2465_v0 }
  0x28   :  { %2167 = vmatmul.mubr.bf16.vlgmr.msra.gmra.mrb[0].mxu0 %v2388_v9 }
  0x29   :  { %2206 = vmatprep.mubr.msk.bf16.mxu0 %vm2466_vm0, %v2465_v0  ;;  %2203 = vmatpush3.bf16.msra.mxu0 %v2390_v11 }
  0x2a   :  { %2204 = vmatprep.subr.bf16.mxu0 %v2465_v0 }
  0x2d   :  { %2205 = vmatpush3.bf16.msra.mxu0 %v2392_v13 }
  0x2e   :  { %2218 = vmatprep.subr.bf16.mxu0 %v2465_v0 }
  0xfb   :  { %v2616_v14 = vpop.f32.mrb[0].mxu0 }
  0xfc   :  { %v2168_v17 = vpop.f32.mrb[1].mxu0  ;;  %v2627_v19 = vadd.f32 %v1931_v15, %v2616_v14 }
  0xfd   :  { %v2624_v18 = vpop.f32.mrb[2].mxu0 }
  0xfe   :  { %v2630_v20 = vadd.f32 %v1932_v16, %v2624_v18  ;;  %v2169_v21 = vpop.f32.mrb[3].mxu0 }
 0x100   :  { %v2640_v24 = vpack.c.bf16 %v2630_v20, %v2627_v19 }
 0x102   :  { %2175 = vmatmul.mubr.msk.bf16.vlgmr.msra.gmra.mrb[0].mxu1 %vm239_vm1, %v2640_v24  ;;  %2207 = vmatmul.mubr.msk.bf16.vlgmr.msra.gmra.mrb[4].mxu0 %vm239_vm1, %v2640_v24 }
 0x103   :  { %2179 = vmatpush3.bf16.msra.mxu1 %v2393_v22  ;;  %2219 = vmatpush3.bf16.msra.mxu0 %v2394_v23 }
 0x104   :  { %2180 = vmatprep.subr.bf16.mxu1 %v2465_v0  ;;  %2220 = vmatprep.subr.bf16.mxu0 %v2465_v0 }
 0x105   :  { %2182 = vmatprep.mubr.msk.bf16.mxu1 %vm2466_vm0, %v2465_v0  ;;  %2222 = vmatprep.mubr.msk.bf16.mxu0 %vm2466_vm0, %v2465_v0 }
 0x107   :  { %2181 = vmatpush3.bf16.msra.mxu1 %v2395_v25  ;;  %2221 = vmatpush3.bf16.msra.mxu0 %v2396_v26 }
 0x108   :  { %2186 = vmatprep.subr.bf16.mxu1 %v2465_v0  ;;  %2234 = vmatprep.subr.bf16.mxu0 %v2465_v0 }
 0x10a   :  { %2183 = vmatmul.mubr.msk.bf16.vlgmr.msra.gmra.mrb[4].mxu1 %vm239_vm1, %v2640_v24  ;;  %2223 = vmatmul.mubr.msk.bf16.vlgmr.msra.gmra.mrb[8].mxu0 %vm239_vm1, %v2640_v24 }
 0x10b   :  { %2187 = vmatpush3.bf16.msra.mxu1 %v2397_v27  ;;  %2235 = vmatpush3.bf16.msra.mxu0 %v2398_v28 }
 0x10c   :  { %2188 = vmatprep.subr.bf16.mxu1 %v2465_v0  ;;  %2236 = vmatprep.subr.bf16.mxu0 %v2465_v0 }
 0x10d   :  { %2190 = vmatprep.mubr.msk.bf16.mxu1 %vm2466_vm0, %v2465_v0  ;;  %2238 = vmatprep.mubr.msk.bf16.mxu0 %vm2466_vm0, %v2465_v0 }
 0x10f   :  { %2189 = vmatpush3.bf16.msra.mxu1 %v2399_v29  ;;  %2237 = vmatpush3.bf16.msra.mxu0 %v2400_v30 }
 0x110   :  { %2194 = vmatprep.subr.bf16.mxu1 %v2465_v0  ;;  %2250 = vmatprep.subr.bf16.mxu0 %v2465_v0 }
 0x112   :  { %2191 = vmatmul.mubr.msk.bf16.vlgmr.msra.gmra.mrb[8].mxu1 %vm239_vm1, %v2640_v24  ;;  %2239 = vmatmul.mubr.msk.bf16.vlgmr.msra.gmra.mrb[12].mxu0 %vm239_vm1, %v2640_v24 }
 0x113   :  { %2195 = vmatpush3.bf16.msra.mxu1 %v2401_v31  ;;  %2251 = vmatpush3.bf16.msra.mxu0 %v2402_v32 }
 0x114   :  { %2196 = vmatprep.subr.bf16.mxu1 %v2465_v0  ;;  %2252 = vmatprep.subr.bf16.mxu0 %v2465_v0 }
 0x115   :  { %2198 = vmatprep.mubr.msk.bf16.mxu1 %vm2466_vm0, %v2465_v0  ;;  %2254 = vmatprep.mubr.msk.bf16.mxu0 %vm2466_vm0, %v2465_v0 }
 0x117   :  { %2197 = vmatpush3.bf16.msra.mxu1 %v2403_v33  ;;  %2253 = vmatpush3.bf16.msra.mxu0 %v2404_v34 }
 0x118   :  { %2210 = vmatprep.subr.bf16.mxu1 %v2465_v0  ;;  %2266 = vmatprep.subr.bf16.mxu0 %v2465_v0 }
 0x11a   :  { %2199 = vmatmul.mubr.msk.bf16.vlgmr.msra.gmra.mrb[12].mxu1 %vm239_vm1, %v2640_v24  ;;  %2255 = vmatmul.mubr.msk.bf16.vlgmr.msra.gmra.mrb[16].mxu0 %vm239_vm1, %v2640_v24 }
 0x11b   :  { %2211 = vmatpush3.bf16.msra.mxu1 %v2405_v35  ;;  %2214 = vmatprep.mubr.msk.bf16.mxu1 %vm2466_vm0, %v2465_v0 }
 0x11c   :  { %2212 = vmatprep.subr.bf16.mxu1 %v2465_v0  ;;  %2268 = vmatprep.mubr.msk.bf16.mxu0 %vm2466_vm0, %v2465_v0 }
 0x11f   :  { %2213 = vmatpush3.bf16.msra.mxu1 %v2406_v36 }
 0x120   :  { %2226 = vmatprep.subr.bf16.mxu1 %v2465_v0 }
 0x122   :  { %2215 = vmatmul.mubr.msk.bf16.vlgmr.msra.gmra.mrb[16].mxu1 %vm239_vm1, %v2640_v24 }
 0x123   :  { %2227 = vmatpush3.bf16.msra.mxu1 %v2407_v37  ;;  %2230 = vmatprep.mubr.msk.bf16.mxu1 %vm2466_vm0, %v2465_v0 }
 0x124   :  { %2228 = vmatprep.subr.bf16.mxu1 %v2465_v0 }
 0x127   :  { %2229 = vmatpush3.bf16.msra.mxu1 %v2408_v38 }
 0x128   :  { %2242 = vmatprep.subr.bf16.mxu1 %v2465_v0 }
 0x12a   :  { %2231 = vmatmul.mubr.msk.bf16.vlgmr.msra.gmra.mrb[20].mxu1 %vm239_vm1, %v2640_v24 }
 0x12b   :  { %2243 = vmatpush3.bf16.msra.mxu1 %v2409_v39  ;;  %2246 = vmatprep.mubr.msk.bf16.mxu1 %vm2466_vm0, %v2465_v0 }
 0x12c   :  { %2244 = vmatprep.subr.bf16.mxu1 %v2465_v0 }
 0x12f   :  { %2245 = vmatpush3.bf16.msra.mxu1 %v2410_v40 }
 0x130   :  { %2258 = vmatprep.subr.bf16.mxu1 %v2465_v0 }
 0x132   :  { %2247 = vmatmul.mubr.msk.bf16.vlgmr.msra.gmra.mrb[24].mxu1 %vm239_vm1, %v2640_v24 }
 0x133   :  { %2259 = vmatpush3.bf16.msra.mxu1 %v2411_v41  ;;  %2262 = vmatprep.mubr.msk.bf16.mxu1 %vm2466_vm0, %v2465_v0 }
 0x134   :  { %2260 = vmatprep.subr.bf16.mxu1 %v2465_v0 }
 0x137   :  { %2261 = vmatpush3.bf16.msra.mxu1 %v2412_v42 }
 0x138   :  { %2272 = vmatprep.subr.bf16.mxu1 %v2465_v0 }
 0x13a   :  { %2263 = vmatmul.mubr.msk.bf16.vlgmr.msra.gmra.mrb[28].mxu1 %vm239_vm1, %v2640_v24 }
 0x13b   :  { %2274 = vmatprep.mubr.msk.bf16.mxu1 %vm2466_vm0, %v2465_v0 }
 0x1d5   :  { %v277_v43 = vpop.f32.mrb[0].mxu1  ;;  %v489_v44 = vpop.f32.mrb[4].mxu0 }
 0x1d6   :  { %v2176_v45 = vpop.f32.mrb[1].mxu1  ;;  %v2208_v46 = vpop.f32.mrb[5].mxu0  ;;  %v867_v49 = vmul.f32 0.35355338, %v277_v43 }
 0x1d7   :  { %v280_v47 = vpop.f32.mrb[2].mxu1  ;;  %v492_v48 = vpop.f32.mrb[6].mxu0 }
 0x1d8   :  { %v868_v50 = vmul.f32 0.35355338, %v280_v47  ;;  %v879_v51 = vpack.c.bf16 %v492_v48, %v489_v44  ;;  %v2177_v52 = vpop.f32.mrb[3].mxu1  ;;  %v2209_v53 = vpop.f32.mrb[7].mxu0 }
 0x1da   :  { %v875_v54 = vpack.c.bf16 %v868_v50, %v867_v49  ;;  %v888_v55 = vsel %vm883_vm2, %v879_v51, 0 }
 0x1db   :  { %2267 = vmatpush3.bf16.xpose.msra.mxu0 %v888_v55 }
 0x1dc   :  { %2278 = vmatprep.subr.bf16.mxu0 %v2465_v0 }
 0x1dd   :  { %v330_v56 = vpop.f32.mrb[4].mxu1  ;;  %v595_v57 = vpop.f32.mrb[8].mxu0 }
 0x1de   :  { %v2184_v58 = vpop.f32.mrb[5].mxu1  ;;  %v2224_v59 = vpop.f32.mrb[9].mxu0  ;;  %v869_v62 = vmul.f32 0.35355338, %v330_v56  ;;  %v170_v56 = vld [vmem:[%s2960_s3] sm:$0xff] }
 0x1df   :  { %v333_v60 = vpop.f32.mrb[6].mxu1  ;;  %v598_v61 = vpop.f32.mrb[10].mxu0  ;;  %v171_v58 = vld [vmem:[%s2960_s3 + $0x8] sm:$0xff] }
 0x1e0   :  { %v870_v63 = vmul.f32 0.35355338, %v333_v60  ;;  %v881_v1 = vpack.c.bf16 %v598_v61, %v595_v57  ;;  %v2185_v2 = vpop.f32.mrb[7].mxu1  ;;  %v2225_v3 = vpop.f32.mrb[11].mxu0 }
 0x1e2   :  { %v876_v4 = vpack.c.bf16 %v870_v63, %v869_v62  ;;  %v982_v5 = vsel %vm883_vm2, %v881_v1, 0  ;;  %2269 = vmatmul.mubr.msk.bf16.vlgmr.msra.gmra.mrb[20].mxu0 %vm883_vm2, %v875_v54 }
 0x1e3   :  { %2279 = vmatpush3.bf16.xpose.msra.mxu0 %v982_v5  ;;  %2280 = vmatprep.mubr.msk.bf16.mxu0 %vm2466_vm0, %v2465_v0 }
 0x1e4   :  { %2290 = vmatprep.subr.bf16.mxu0 %v2465_v0 }
 0x1e5   :  { %v383_v6 = vpop.f32.mrb[8].mxu1  ;;  %v701_v7 = vpop.f32.mrb[12].mxu0 }
 0x1e6   :  { %v2192_v8 = vpop.f32.mrb[9].mxu1  ;;  %v2240_v9 = vpop.f32.mrb[13].mxu0  ;;  %v871_v12 = vmul.f32 0.35355338, %v383_v6 }
 0x1e7   :  { %v386_v10 = vpop.f32.mrb[10].mxu1  ;;  %v704_v11 = vpop.f32.mrb[14].mxu0 }
 0x1e8   :  { %v872_v13 = vmul.f32 0.35355338, %v386_v10  ;;  %v1165_v15 = vpack.c.bf16 %v704_v11, %v701_v7  ;;  %v2193_v16 = vpop.f32.mrb[11].mxu1  ;;  %v2241_v17 = vpop.f32.mrb[15].mxu0 }
 0x1ea   :  { %v877_v21 = vpack.c.bf16 %v872_v13, %v871_v12 }
 0x1ec   :  { %2281 = vmatmul.mubr.msk.bf16.vlgmr.msra.gmra.mrb[24].mxu0 %vm883_vm2, %v877_v21 }
 0x1ed   :  { %2291 = vmatpush3.bf16.msra.mxu0 %v1165_v15  ;;  %v436_v22 = vpop.f32.mrb[12].mxu1  ;;  %v2772_v23 = vpop.f32.mrb[16].mxu0  ;;  %2292 = vmatprep.mubr.msk.bf16.mxu0 %vm2466_vm0, %v2465_v0 }
 0x1ee   :  { %v2200_v24 = vpop.f32.mrb[13].mxu1  ;;  %v2256_v25 = vpop.f32.mrb[17].mxu0  ;;  %2302 = vmatprep.subr.bf16.mxu0 %v2465_v0  ;;  %v873_v28 = vmul.f32 0.35355338, %v436_v22 }
 0x1ef   :  { %v439_v26 = vpop.f32.mrb[14].mxu1  ;;  %v2777_v27 = vpop.f32.mrb[18].mxu0 }
 0x1f0   :  { %v874_v29 = vmul.f32 0.35355338, %v439_v26  ;;  %v1167_v30 = vpack.c.bf16 %v2777_v27, %v2772_v23  ;;  %v2201_v31 = vpop.f32.mrb[15].mxu1  ;;  %v2257_v32 = vpop.f32.mrb[19].mxu0 }
 0x1f2   :  { %v878_v33 = vpack.c.bf16 %v874_v29, %v873_v28 }
 0x1f5   :  { %v542_v34 = vpop.f32.mrb[16].mxu1 }
 0x1f6   :  { %v2216_v35 = vpop.f32.mrb[17].mxu1 }
 0x1f7   :  { %v545_v36 = vpop.f32.mrb[18].mxu1 }
 0x1f8   :  { %v880_v37 = vpack.c.bf16 %v545_v36, %v542_v34  ;;  %v2217_v38 = vpop.f32.mrb[19].mxu1 }
 0x1fa   :  { %v935_v39 = vsel %vm883_vm2, %v880_v37, 0 }
 0x1fb   :  { %2273 = vmatpush3.bf16.xpose.msra.mxu1 %v935_v39 }
 0x1fc   :  { %2284 = vmatprep.subr.bf16.mxu1 %v2465_v0 }
 0x1fd   :  { %v648_v40 = vpop.f32.mrb[20].mxu1 }
 0x1fe   :  { %v2232_v41 = vpop.f32.mrb[21].mxu1 }
 0x1ff   :  { %v651_v42 = vpop.f32.mrb[22].mxu1 }
 0x200   :  { %v882_v43 = vpack.c.bf16 %v651_v42, %v648_v40  ;;  %v2233_v44 = vpop.f32.mrb[23].mxu1 }
 0x202   :  { %v1029_v45 = vsel %vm883_vm2, %v882_v43, 0  ;;  %2275 = vmatmul.mubr.msk.bf16.vlgmr.msra.gmra.mrb[32].mxu1 %vm883_vm2, %v876_v4 }
 0x203   :  { %2285 = vmatpush3.bf16.xpose.msra.mxu1 %v1029_v45  ;;  %2286 = vmatprep.mubr.msk.bf16.mxu1 %vm2466_vm0, %v2465_v0 }
 0x204   :  { %2296 = vmatprep.subr.bf16.mxu1 %v2465_v0 }
 0x205   :  { %v754_v46 = vpop.f32.mrb[24].mxu1 }
 0x206   :  { %v2248_v47 = vpop.f32.mrb[25].mxu1 }
 0x207   :  { %v757_v48 = vpop.f32.mrb[26].mxu1 }
 0x208   :  { %v1166_v49 = vpack.c.bf16 %v757_v48, %v754_v46  ;;  %v2249_v50 = vpop.f32.mrb[27].mxu1 }
 0x20a   :  { %2287 = vmatmul.mubr.msk.bf16.vlgmr.msra.gmra.mrb[36].mxu1 %vm883_vm2, %v878_v33 }
 0x20b   :  { %2297 = vmatpush3.bf16.msra.mxu1 %v1166_v49  ;;  %2298 = vmatprep.mubr.msk.bf16.mxu1 %vm2466_vm0, %v2465_v0 }
 0x20c   :  { %2308 = vmatprep.subr.bf16.mxu1 %v2465_v0 }
 0x20d   :  { %v2792_v51 = vpop.f32.mrb[28].mxu1 }
 0x20e   :  { %v2264_v52 = vpop.f32.mrb[29].mxu1 }
 0x20f   :  { %v2794_v53 = vpop.f32.mrb[30].mxu1 }
 0x210   :  { %v1168_v54 = vpack.c.bf16 %v2794_v53, %v2792_v51  ;;  %v2265_v55 = vpop.f32.mrb[31].mxu1  ;;  %v2025_v51 = vld [vmem:[%s2961_s5 + $0x10] sm:$0xf] }
 0x211   :  { %v1359_v53 = vsel %vm1357_vm4, %v2025_v51, 0 }
 0x2b5   :  { %v924_v57 = vpop.f32.mrb[20].mxu0 }
 0x2b6   :  { %v925_v59 = vadd.f32 %v924_v57, %v170_v56  ;;  %v2270_v60 = vpop.f32.mrb[21].mxu0 }
 0x2b7   :  { %v927_v61 = vpop.f32.mrb[22].mxu0 }
 0x2b8   :  { %v928_v62 = vadd.f32 %v927_v61, %v171_v58  ;;  %v2271_v63 = vpop.f32.mrb[23].mxu0  ;;  %v1073_v1 = vsel %vm1072_vm3, %v925_v59, -inf }
 0x2b9   :  { %1074 = vmax.xlane.f32.xlu0 %v1073_v1 }
 0x2ba   :  { %v1076_v2 = vsel %vm1072_vm3, %v928_v62, -inf }
 0x2bd   :  { %1077 = vmax.xlane.f32.xlu0 %v1076_v2 }
 0x2bf   :  { %v1018_v3 = vpop.f32.mrb[24].mxu0 }
 0x2c0   :  { %v1019_v4 = vadd.f32 %v1018_v3, %v170_v56  ;;  %v2282_v5 = vpop.f32.mrb[25].mxu0 }
 0x2c1   :  { %v1021_v6 = vpop.f32.mrb[26].mxu0 }
 0x2c2   :  { %v2283_v7 = vpop.f32.mrb[27].mxu0  ;;  %v1085_v8 = vsel %vm1072_vm3, %v1019_v4, -inf  ;;  %v1022_v17 = vadd.f32 %v1021_v6, %v171_v58 }
 0x2c3   :  { %1086 = vmax.xlane.f32.xlu0 %v1085_v8 }
 0x2c4   :  { %v1088_v32 = vsel %vm1072_vm3, %v1022_v17, -inf }
 0x2d5   :  { %v971_v9 = vpop.f32.mrb[32].mxu1 }
 0x2d6   :  { %v972_v10 = vadd.f32 %v971_v9, %v170_v56  ;;  %v2276_v11 = vpop.f32.mrb[33].mxu1 }
 0x2d7   :  { %v974_v12 = vpop.f32.mrb[34].mxu1 }
 0x2d8   :  { %v975_v13 = vadd.f32 %v974_v12, %v171_v58  ;;  %v2277_v15 = vpop.f32.mrb[35].mxu1  ;;  %v1079_v16 = vsel %vm1072_vm3, %v972_v10, -inf }
 0x2d9   :  { %1080 = vmax.xlane.f32.xlu1 %v1079_v16 }
 0x2da   :  { %v1082_v21 = vsel %vm1072_vm3, %v975_v13, -inf }
 0x2dd   :  { %1083 = vmax.xlane.f32.xlu1 %v1082_v21  ;;  %v1065_v22 = vpop.f32.mrb[36].mxu1 }
 0x2de   :  { %v1066_v24 = vadd.f32 %v1065_v22, %v170_v56  ;;  %v2288_v25 = vpop.f32.mrb[37].mxu1 }
 0x2df   :  { %v1068_v26 = vpop.f32.mrb[38].mxu1 }
 0x2e0   :  { %v1069_v28 = vadd.f32 %v1068_v26, %v171_v58  ;;  %v2289_v29 = vpop.f32.mrb[39].mxu1  ;;  %v1091_v31 = vsel %vm1072_vm3, %v1066_v24, -inf }
 0x2e1   :  { %1092 = vmax.xlane.f32.xlu0 %v1091_v31  ;;  %1089 = vmax.xlane.f32.xlu1 %v1088_v32 }
 0x2e2   :  { %v1094_v33 = vsel %vm1072_vm3, %v1069_v28, -inf }
 0x2e5   :  { %1095 = vmax.xlane.f32.xlu1 %v1094_v33 }
 0x346   :  { %v1075_v34 = vpop.xlane.xlu0 %1074 }
 0x347   :  { %v1097_v35 = vsub.f32 %v925_v59, %v1075_v34 }
 0x349   :  { %v1105_v36 = vmul.f32 1.442695, %v1097_v35 }
 0x34a   :  { %v1078_v37 = vpop.xlane.xlu0 %1077 }
 0x34b   :  { %2421 = vpow2.f32 %v1105_v36  ;;  %v1098_v38 = vsub.f32 %v928_v62, %v1078_v37 }
 0x34d   :  { %v1107_v39 = vmul.f32 1.442695, %v1098_v38 }
 0x34f   :  { %2423 = vpow2.f32 %v1107_v39 }
 0x350   :  { %v1087_v44 = vpop.xlane.xlu0 %1086 }
 0x351   :  { %v1101_v45 = vsub.f32 %v1019_v4, %v1087_v44 }
 0x353   :  { %v1113_v48 = vmul.f32 1.442695, %v1101_v45 }
 0x355   :  { %v2422_v40 = vpop.eup %2421 }
 0x356   :  { %v1121_v41 = vsel %vm1072_vm3, %v2422_v40, 0.0 }
 0x357   :  { %1122 = vadd.xlane.f32.xlu0 %v1121_v41 }
 0x359   :  { %v2424_v42 = vpop.eup %2423 }
 0x35a   :  { %v1124_v43 = vsel %vm1072_vm3, %v2424_v42, 0.0 }
 0x35b   :  { %1125 = vadd.xlane.f32.xlu1 %v1124_v43 }
 0x366   :  { %v1081_v46 = vpop.xlane.xlu1 %1080 }
 0x367   :  { %v1099_v47 = vsub.f32 %v972_v10, %v1081_v46 }
 0x369   :  { %v1109_v49 = vmul.f32 1.442695, %v1099_v47  ;;  %v2027_v47 = vld [vmem:[%s2961_s5 + $0x18] sm:$0xf] }
 0x36a   :  { %v1084_v50 = vpop.xlane.xlu1 %1083 }
 0x36b   :  { %2425 = vpow2.f32 %v1109_v49  ;;  %v1100_v52 = vsub.f32 %v975_v13, %v1084_v50  ;;  %v2028_v49 = vld [vmem:[%s2961_s5 + $0x1c] sm:$0xf] }
 0x36c   :  { %2427 = vpow2.f32 %v1113_v48  ;;  %v1453_v48 = vsel %vm1357_vm4, %v2027_v47, 0  ;;  %v1500_v50 = vsel %vm1357_vm4, %v2028_v49, 0 }
 0x36d   :  { %v1111_v55 = vmul.f32 1.442695, %v1100_v52 }
 0x36e   :  { %v1093_v56 = vpop.xlane.xlu0 %1092  ;;  %v1090_v57 = vpop.xlane.xlu1 %1089 }
 0x36f   :  { %2429 = vpow2.f32 %v1111_v55  ;;  %v1103_v58 = vsub.f32 %v1066_v24, %v1093_v56  ;;  %v1102_v59 = vsub.f32 %v1022_v17, %v1090_v57 }
 0x371   :  { %v1117_v60 = vmul.f32 1.442695, %v1103_v58  ;;  %v1115_v61 = vmul.f32 1.442695, %v1102_v59 }
 0x372   :  { %v1096_v62 = vpop.xlane.xlu1 %1095 }
 0x373   :  { %2431 = vpow2.f32 %v1117_v60  ;;  %v1104_v63 = vsub.f32 %v1069_v28, %v1096_v62 }
 0x374   :  { %2433 = vpow2.f32 %v1115_v61 }
 0x375   :  { %v2426_v1 = vpop.eup %2425  ;;  %v1119_v2 = vmul.f32 1.442695, %v1104_v63 }
 0x376   :  { %v1127_v3 = vsel %vm1072_vm3, %v2426_v1, 0.0  ;;  %v2428_v4 = vpop.eup %2427 }
 0x377   :  { %2435 = vpow2.f32 %v1119_v2  ;;  %1128 = vadd.xlane.f32.xlu0 %v1127_v3  ;;  %v1133_v6 = vsel %vm1072_vm3, %v2428_v4, 0.0 }
 0x379   :  { %v2430_v5 = vpop.eup %2429 }
 0x37a   :  { %v1130_v7 = vsel %vm1072_vm3, %v2430_v5, 0.0 }
 0x37b   :  { %1134 = vadd.xlane.f32.xlu0 %v1133_v6  ;;  %1131 = vadd.xlane.f32.xlu1 %v1130_v7 }
 0x37d   :  { %v2432_v8 = vpop.eup %2431 }
 0x37e   :  { %v2434_v9 = vpop.eup %2433  ;;  %v1139_v10 = vsel %vm1072_vm3, %v2432_v8, 0.0 }
 0x37f   :  { %1140 = vadd.xlane.f32.xlu0 %v1139_v10  ;;  %v1136_v11 = vsel %vm1072_vm3, %v2434_v9, 0.0 }
 0x380   :  { %1137 = vadd.xlane.f32.xlu1 %v1136_v11 }
 0x381   :  { %v2436_v12 = vpop.eup %2435 }
 0x382   :  { %v1142_v13 = vsel %vm1072_vm3, %v2436_v12, 0.0 }
 0x384   :  { %1143 = vadd.xlane.f32.xlu1 %v1142_v13 }
 0x3e4   :  { %v1123_v15 = vpop.xlane.xlu0 %1122 }
 0x3e5   :  { %2437 = vrcp.f32 %v1123_v15 }
 0x3e8   :  { %v1126_v16 = vpop.xlane.xlu1 %1125 }
 0x3e9   :  { %2439 = vrcp.f32 %v1126_v16 }
 0x3ef   :  { %v2438_v17 = vpop.eup %2437 }
 0x3f0   :  { %v1153_v22 = vmul.f32 %v2438_v17, %v2422_v40 }
 0x3f3   :  { %v2440_v21 = vpop.eup %2439 }
 0x3f4   :  { %v1154_v24 = vmul.f32 %v2440_v21, %v2424_v42 }
 0x3f6   :  { %v1161_v25 = vpack.c.bf16 %v1154_v24, %v1153_v22 }
 0x3f8   :  { %2293 = vmatmul.mubr.msk.bf16.vlgmr.msra.gmra.mrb[28].mxu0 %vm1072_vm3, %v1161_v25 }
 0x3f9   :  { %2303 = vmatpush3.bf16.msra.mxu0 %v1167_v30  ;;  %2304 = vmatprep.mubr.msk.bf16.mxu0 %vm2466_vm0, %v2465_v0 }
 0x3fa   :  { %2314 = vmatprep.subr.bf16.mxu0 %v2465_v0 }
 0x404   :  { %v1129_v26 = vpop.xlane.xlu0 %1128 }
 0x405   :  { %2441 = vrcp.f32 %v1129_v26 }
 0x408   :  { %v1135_v28 = vpop.xlane.xlu0 %1134  ;;  %v1132_v29 = vpop.xlane.xlu1 %1131 }
 0x409   :  { %2443 = vrcp.f32 %v1132_v29 }
 0x40a   :  { %2445 = vrcp.f32 %v1135_v28 }
 0x40c   :  { %v1141_v31 = vpop.xlane.xlu0 %1140 }
 0x40d   :  { %v1138_v32 = vpop.xlane.xlu1 %1137 }
 0x40e   :  { %2447 = vrcp.f32 %v1138_v32 }
 0x40f   :  { %2449 = vrcp.f32 %v1141_v31  ;;  %v2442_v34 = vpop.eup %2441 }
 0x410   :  { %v1155_v27 = vmul.f32 %v2442_v34, %v2426_v1  ;;  %v2413_v34 = vld [vmem:[%s2962_s6 + $0x10] sm:$0xff]  }
 0x411   :  { %v1144_v33 = vpop.xlane.xlu1 %1143 }
 0x412   :  { %2451 = vrcp.f32 %v1144_v33 }
 0x413   :  { %v2444_v23 = vpop.eup %2443 }
 0x414   :  { %v1156_v30 = vmul.f32 %v2444_v23, %v2430_v5  ;;  %v2446_v35 = vpop.eup %2445  ;;  %v2414_v23 = vld [vmem:[%s2962_s6 + $0x18] sm:$0xff]  }
 0x415   :  { %v1157_v38 = vmul.f32 %v2446_v35, %v2428_v4 }
 0x416   :  { %v1162_v36 = vpack.c.bf16 %v1156_v30, %v1155_v27 }
 0x418   :  { %v2448_v37 = vpop.eup %2447  ;;  %2299 = vmatmul.mubr.msk.bf16.vlgmr.msra.gmra.mrb[40].mxu1 %vm1072_vm3, %v1162_v36 }
 0x419   :  { %v1158_v39 = vmul.f32 %v2448_v37, %v2434_v9  ;;  %v2450_v40 = vpop.eup %2449  ;;  %2309 = vmatpush3.bf16.msra.mxu1 %v1168_v54  ;;  %2310 = vmatprep.mubr.msk.bf16.mxu1 %vm2466_vm0, %v2465_v0  ;;  %v2026_v54 = vld [vmem:[%s2961_s5 + $0x14] sm:$0xf] }
 0x41a   :  { %2338 = vmatprep.subr.bf16.mxu1 %v2465_v0  ;;  %v1159_v43 = vmul.f32 %v2450_v40, %v2432_v8  ;;  %v1406_v46 = vsel %vm1357_vm4, %v2026_v54, 0  ;;  %v2035_v40 = vld [vmem:[%s2964_s11 + $0x1] ss:$0 sm:$0xff] }
 0x41b   :  { %v1163_v41 = vpack.c.bf16 %v1158_v39, %v1157_v38 }
 0x41c   :  { %v2452_v42 = vpop.eup %2451 }
 0x41d   :  { %v1160_v44 = vmul.f32 %v2452_v42, %v2436_v12  ;;  %2305 = vmatmul.mubr.msk.bf16.vlgmr.msra.gmra.mrb[32].mxu0 %vm1072_vm3, %v1163_v41 }
 0x41e   :  { %2316 = vmatprep.mubr.msk.bf16.mxu0 %vm2466_vm0, %v2465_v0  ;;  %2315 = vmatpush3.bf16.msra.mxu0 %v1359_v53 }
 0x41f   :  { %v1164_v45 = vpack.c.bf16 %v1160_v44, %v1159_v43  ;;  %2320 = vmatprep.subr.bf16.mxu0 %v2465_v0  ;;  %v2036_v43 = vld [vmem:[%s2965_s10 + $0x1] ss:$0 sm:$0xff] }
 0x421   :  { %2311 = vmatmul.mubr.msk.bf16.vlgmr.msra.gmra.mrb[44].mxu1 %vm1072_vm3, %v1164_v45 }
 0x422   :  { %2342 = vmatprep.mubr.msk.bf16.mxu1 %vm2466_vm0, %v2465_v0  ;;  %2339 = vmatpush3.bf16.msra.mxu1 %v2413_v34  ;;  %v2063_v34 = vld [vmem:[%s2968_s13 + $0x1] ss:$0 sm:$0xff] }
 0x423   :  { %2340 = vmatprep.subr.bf16.mxu1 %v2465_v0 }
 0x426   :  { %2341 = vmatpush3.bf16.msra.mxu1 %v2414_v23 }
 0x427   :  { %2346 = vmatprep.subr.bf16.mxu1 %v2465_v0 }
 0x4cb   :  { %v1206_v52 = vpop.f32.mrb[28].mxu0 }
 0x4cc   :  { %v2294_v55 = vpop.f32.mrb[29].mxu0 }
 0x4cd   :  { %v1209_v56 = vpop.f32.mrb[30].mxu0 }
 0x4ce   :  { %v1345_v57 = vpack.c.bf16 %v1209_v56, %v1206_v52  ;;  %v2295_v58 = vpop.f32.mrb[31].mxu0  ;;  %v2045_v52 = vld [vmem:[%s2966_s8 + $0x1] ss:$0 sm:$0xff] }
 0x4d0   :  { %2317 = vmatmul.mubr.msk.bf16.vlgmr.msra.gmra.mrb[36].mxu0 %vm883_vm2, %v1345_v57 }
 0x4d1   :  { %2321 = vmatpush3.bf16.msra.mxu0 %v1406_v46  ;;  %2322 = vmatprep.mubr.msk.bf16.mxu0 %vm2466_vm0, %v2465_v0 }
 0x4d2   :  { %2326 = vmatprep.subr.bf16.mxu0 %v2465_v0 }
 0x4eb   :  { %v1250_v59 = vpop.f32.mrb[40].mxu1 }
 0x4ec   :  { %v2300_v60 = vpop.f32.mrb[41].mxu1 }
 0x4ed   :  { %v1253_v61 = vpop.f32.mrb[42].mxu1 }
 0x4ee   :  { %v1346_v62 = vpack.c.bf16 %v1253_v61, %v1250_v59  ;;  %v2301_v63 = vpop.f32.mrb[43].mxu1 }
 0x4f0   :  { %v1294_v1 = vpop.f32.mrb[32].mxu0  ;;  %2323 = vmatmul.mubr.msk.bf16.vlgmr.msra.gmra.mrb[36].mxu0 %vm883_vm2, %v1346_v62 }
 0x4f1   :  { %v2306_v2 = vpop.f32.mrb[33].mxu0  ;;  %2327 = vmatpush3.bf16.msra.mxu0 %v1453_v48  ;;  %2328 = vmatprep.mubr.msk.bf16.mxu0 %vm2466_vm0, %v2465_v0  ;;  %v2415_v48 = vld [vmem:[%s2963_s7 + $0x20] sm:$0xff]  }
 0x4f2   :  { %v1297_v3 = vpop.f32.mrb[34].mxu0  ;;  %2332 = vmatprep.subr.bf16.mxu0 %v2465_v0 }
 0x4f3   :  { %v1347_v4 = vpack.c.bf16 %v1297_v3, %v1294_v1  ;;  %v2307_v5 = vpop.f32.mrb[35].mxu0  ;;  %v2060_v1 = vld [vmem:[%s2967_s9 + $0x1] ss:$0 sm:$0xff] }
 0x4f4   :  { %v1338_v6 = vpop.f32.mrb[44].mxu1 }
 0x4f5   :  { %v2312_v7 = vpop.f32.mrb[45].mxu1 }
 0x4f6   :  { %v1341_v8 = vpop.f32.mrb[46].mxu1 }
 0x4f7   :  { %v1348_v9 = vpack.c.bf16 %v1341_v8, %v1338_v6  ;;  %v2313_v10 = vpop.f32.mrb[47].mxu1 }
 0x4fc   :  { %2329 = vmatmul.mubr.msk.bf16.vlgmr.msra.gmra.mrb[36].mxu0 %vm883_vm2, %v1347_v4 }
 0x4fd   :  { %2333 = vmatpush3.bf16.msra.mxu0 %v1500_v50  ;;  %2334 = vmatprep.mubr.msk.bf16.mxu0 %vm2466_vm0, %v2465_v0  ;;  %v2416_v50 = vld [vmem:[%s2963_s7 + $0x28] sm:$0xff]  }
 0x508   :  { %2335 = vmatmul.mubr.msk.bf16.vlgmr.msra.gmra.mrb[36].mxu0 %vm883_vm2, %v1348_v9 }
 0x5db   :  { %v1536_v11 = vpop.f32.mrb[36].mxu0 }
 0x5dc   :  { %v2336_v12 = vpop.f32.mrb[37].mxu0  ;;  %v1553_v13 = vsel %vm239_vm1, %v1536_v11, 0.0 }
 0x5dd   :  { %1554 = vadd.xlane.f32.xlu0 %v1553_v13  ;;  %v1539_v15 = vpop.f32.mrb[38].mxu0 }
 0x5de   :  { %v2337_v16 = vpop.f32.mrb[39].mxu0  ;;  %v1556_v17 = vsel %vm239_vm1, %v1539_v15, 0.0 }
 0x5df   :  { %1557 = vadd.xlane.f32.xlu1 %v1556_v17 }
 0x66a   :  { %v1555_v21 = vpop.xlane.xlu0 %1554 }
 0x66b   :  { %v1560_v22 = vmul.f32 0.03125, %v1555_v21 }
 0x66c   :  { %v1558_v24 = vpop.xlane.xlu1 %1557 }
 0x66d   :  { %v1562_v25 = vsub.f32 %v1536_v11, %v1560_v22  ;;  %v1561_v26 = vmul.f32 0.03125, %v1558_v24 }
 0x66f   :  { %v1563_v28 = vsub.f32 %v1539_v15, %v1561_v26  ;;  %v1564_v29 = vmul.f32 %v1562_v25, %v1562_v25 }
 0x671   :  { %v1566_v31 = vsel %vm239_vm1, %v1564_v29, 0.0  ;;  %v1565_v32 = vmul.f32 %v1563_v28, %v1563_v28 }
 0x672   :  { %1567 = vadd.xlane.f32.xlu0 %v1566_v31 }
 0x673   :  { %v1569_v33 = vsel %vm239_vm1, %v1565_v32, 0.0 }
 0x674   :  { %1570 = vadd.xlane.f32.xlu1 %v1569_v33 }
 0x6ff   :  { %v1568_v27 = vpop.xlane.xlu0 %1567 }
 0x700   :  { %v1572_v30 = vmul.f32 0.03125, %v1568_v27 }
 0x701   :  { %v1571_v35 = vpop.xlane.xlu1 %1570 }
 0x702   :  { %v1574_v36 = vadd.f32 1e-06, %v1572_v30  ;;  %v1573_v37 = vmul.f32 0.03125, %v1571_v35  ;;  %v2064_v30 = vld [vmem:[%s2969_s12 + $0x1] ss:$0 sm:$0xff] }
 0x704   :  { %2453 = vrsqrt.f32 %v1574_v36  ;;  %v1575_v38 = vadd.f32 1e-06, %v1573_v37 }
 0x706   :  { %2455 = vrsqrt.f32 %v1575_v38 }
 0x70e   :  { %v2454_v39 = vpop.eup %2453 }
 0x70f   :  { %v1578_v41 = vmul.f32 %v2454_v39, %v1562_v25 }
 0x710   :  { %v2456_v42 = vpop.eup %2455 }
 0x711   :  { %v1586_v44 = vmul.f32 %v2035_v40, %v1578_v41  ;;  %v1579_v45 = vmul.f32 %v2456_v42, %v1563_v28 }
 0x713   :  { %v1587_v51 = vmul.f32 %v2035_v40, %v1579_v45  ;;  %v1594_v53 = vadd.f32 %v2036_v43, %v1586_v44 }
 0x715   :  { %v1595_v54 = vadd.f32 %v2036_v43, %v1587_v51  ;;  %v2884_v46 = vadd.f32 %v1594_v53, %v2627_v19  ;;  %v2417_v19 = vld [vmem:[%s2963_s7 + $0x30] sm:$0xff]  }
 0x717   :  { %v2887_v47 = vadd.f32 %v1595_v54, %v2630_v20  ;;  %v2418_v20 = vld [vmem:[%s2963_s7 + $0x38] sm:$0xff]  }
 0x719   :  { %v1600_v49 = vpack.c.bf16 %v2887_v47, %v2884_v46 }
 0x71b   :  { %2343 = vmatmul.mubr.msk.bf16.vlgmr.msra.gmra.mrb[48].mxu1 %vm239_vm1, %v1600_v49 }
 0x71c   :  { %2347 = vmatpush3.bf16.msra.mxu1 %v2415_v48  ;;  %2354 = vmatprep.mubr.msk.bf16.mxu1 %vm2466_vm0, %v2465_v0 }
 0x71d   :  { %2348 = vmatprep.subr.bf16.mxu1 %v2465_v0 }
 0x720   :  { %2349 = vmatpush3.bf16.msra.mxu1 %v2416_v50 }
 0x721   :  { %2350 = vmatprep.subr.bf16.mxu1 %v2465_v0 }
 0x724   :  { %2351 = vmatpush3.bf16.msra.mxu1 %v2417_v19 }
 0x725   :  { %2352 = vmatprep.subr.bf16.mxu1 %v2465_v0 }
 0x728   :  { %2353 = vmatpush3.bf16.msra.mxu1 %v2418_v20  ;;  %v2420_v20 = vld [vmem:[%s2970_s16 + $0x8] sm:$0xff]  }
 0x729   :  { %2358 = vmatprep.subr.bf16.mxu1 %v2465_v0 }
 0x7ee   :  { %v1655_v55 = vpop.f32.mrb[48].mxu1 }
 0x7ef   :  { %v1668_v56 = vadd.f32 %v2045_v52, %v1655_v55  ;;  %v2344_v57 = vpop.f32.mrb[49].mxu1 }
 0x7f0   :  { %v1658_v58 = vpop.f32.mrb[50].mxu1 }
 0x7f1   :  { %v1669_v59 = vadd.f32 %v2045_v52, %v1658_v58  ;;  %v2345_v60 = vpop.f32.mrb[51].mxu1  ;;  %v1670_v61 = vmax.f32 %v1668_v56, 0.0 }
 0x7f3   :  { %v1671_v62 = vmax.f32 %v1669_v59, 0.0 }
 0x7f5   :  { %v1674_v63 = vpack.c.bf16 %v1671_v62, %v1670_v61  ;;  %v2065_v61 = vld [vmem:[%s2971_s15] ss:$0 sm:$0xff] }
 0x7f7   :  { %2355 = vmatmul.mubr.msk.bf16.vlgmr.msra.gmra.mrb[52].mxu1 %vm1708_vm5, %v1674_v63 }
 0x7f8   :  { %2362 = vmatprep.mubr.msk.bf16.mxu1 %vm2466_vm0, %v2465_v0 }
 0x8ca   :  { %v1746_v2 = vpop.f32.mrb[52].mxu1 }
 0x8cb   :  { %v1759_v3 = vadd.f32 %v2060_v1, %v1746_v2  ;;  %v2356_v4 = vpop.f32.mrb[53].mxu1 }
 0x8cc   :  { %v1749_v5 = vpop.f32.mrb[54].mxu1 }
 0x8cd   :  { %v1760_v6 = vadd.f32 %v2060_v1, %v1749_v5  ;;  %v2357_v7 = vpop.f32.mrb[55].mxu1  ;;  %v1765_v8 = vsel %vm239_vm1, %v1759_v3, 0.0 }
 0x8ce   :  { %1766 = vadd.xlane.f32.xlu0 %v1765_v8 }
 0x8cf   :  { %v1768_v9 = vsel %vm239_vm1, %v1760_v6, 0.0 }
 0x8d0   :  { %1769 = vadd.xlane.f32.xlu1 %v1768_v9 }
 0x95b   :  { %v1767_v10 = vpop.xlane.xlu0 %1766 }
 0x95c   :  { %v1771_v11 = vmul.f32 0.03125, %v1767_v10 }
 0x95d   :  { %v1770_v12 = vpop.xlane.xlu1 %1769 }
 0x95e   :  { %v1773_v13 = vsub.f32 %v1759_v3, %v1771_v11  ;;  %v1772_v15 = vmul.f32 0.03125, %v1770_v12 }
 0x960   :  { %v1774_v16 = vsub.f32 %v1760_v6, %v1772_v15  ;;  %v1775_v17 = vmul.f32 %v1773_v13, %v1773_v13 }
 0x962   :  { %v1777_v21 = vsel %vm239_vm1, %v1775_v17, 0.0  ;;  %v1776_v22 = vmul.f32 %v1774_v16, %v1774_v16 }
 0x963   :  { %1778 = vadd.xlane.f32.xlu0 %v1777_v21 }
 0x964   :  { %v1780_v24 = vsel %vm239_vm1, %v1776_v22, 0.0 }
 0x965   :  { %1781 = vadd.xlane.f32.xlu1 %v1780_v24 }
 0x9f0   :  { %v1779_v25 = vpop.xlane.xlu0 %1778 }
 0x9f1   :  { %v1783_v26 = vmul.f32 0.03125, %v1779_v25 }
 0x9f2   :  { %v1782_v28 = vpop.xlane.xlu1 %1781 }
 0x9f3   :  { %v1785_v29 = vadd.f32 1e-06, %v1783_v26  ;;  %v1784_v31 = vmul.f32 0.03125, %v1782_v28 }
 0x9f5   :  { %2457 = vrsqrt.f32 %v1785_v29  ;;  %v1786_v32 = vadd.f32 1e-06, %v1784_v31 }
 0x9f7   :  { %2459 = vrsqrt.f32 %v1786_v32 }
 0x9ff   :  { %v2458_v33 = vpop.eup %2457 }
 0xa00   :  { %v1789_v23 = vmul.f32 %v2458_v33, %v1773_v13 }
 0xa01   :  { %v2460_v27 = vpop.eup %2459 }
 0xa02   :  { %v1797_v35 = vmul.f32 %v2063_v34, %v1789_v23  ;;  %v1790_v36 = vmul.f32 %v2460_v27, %v1774_v16 }
 0xa04   :  { %v1805_v37 = vadd.f32 %v2064_v30, %v1797_v35  ;;  %v1798_v38 = vmul.f32 %v2063_v34, %v1790_v36 }
 0xa06   :  { %v1807_v39 = vadd.f32 %v1805_v37, %v2884_v46  ;;  %v1806_v40 = vadd.f32 %v2064_v30, %v1798_v38 }
 0xa08   :  { %v1811_v41 = vsel %vm239_vm1, %v1807_v39, 0.0  ;;  %v1808_v42 = vadd.f32 %v1806_v40, %v2887_v47  ;;  %v2419_v47 = vld [vmem:[%s2970_s16] sm:$0xff]  }
 0xa09   :  { %1812 = vadd.xlane.f32.xlu0 %v1811_v41  ;;  %2359 = vmatpush3.bf16.msra.mxu1 %v2419_v47 }
 0xa0a   :  { %v1814_v43 = vsel %vm239_vm1, %v1808_v42, 0.0  ;;  %2360 = vmatprep.subr.bf16.mxu1 %v2465_v0  ;;  %v2066_v0 = vld [vmem:[%s2972_s14] ss:$0 sm:$0xff] }
 0xa0b   :  { %1815 = vadd.xlane.f32.xlu1 %v1814_v43 }
 0xa0d   :  { %2361 = vmatpush3.bf16.msra.mxu1 %v2420_v20 }
 0xa96   :  { %v1813_v44 = vpop.xlane.xlu0 %1812 }
 0xa97   :  { %v1817_v45 = vmul.f32 0.03125, %v1813_v44 }
 0xa98   :  { %v1816_v51 = vpop.xlane.xlu1 %1815 }
 0xa99   :  { %v1819_v53 = vsub.f32 %v1807_v39, %v1817_v45  ;;  %v1818_v54 = vmul.f32 0.03125, %v1816_v51 }
 0xa9b   :  { %v1820_v48 = vsub.f32 %v1808_v42, %v1818_v54  ;;  %v1821_v49 = vmul.f32 %v1819_v53, %v1819_v53 }
 0xa9d   :  { %v1823_v50 = vsel %vm239_vm1, %v1821_v49, 0.0  ;;  %v1822_v19 = vmul.f32 %v1820_v48, %v1820_v48 }
 0xa9e   :  { %1824 = vadd.xlane.f32.xlu0 %v1823_v50 }
 0xa9f   :  { %v1826_v46 = vsel %vm239_vm1, %v1822_v19, 0.0 }
 0xaa0   :  { %1827 = vadd.xlane.f32.xlu1 %v1826_v46 }
 0xb2b   :  { %v1825_v52 = vpop.xlane.xlu0 %1824 }
 0xb2c   :  { %v1829_v55 = vmul.f32 0.03125, %v1825_v52 }
 0xb2d   :  { %v1828_v56 = vpop.xlane.xlu1 %1827 }
 0xb2e   :  { %v1831_v57 = vadd.f32 1e-06, %v1829_v55  ;;  %v1830_v58 = vmul.f32 0.03125, %v1828_v56 }
 0xb30   :  { %2461 = vrsqrt.f32 %v1831_v57  ;;  %v1832_v59 = vadd.f32 1e-06, %v1830_v58 }
 0xb32   :  { %2463 = vrsqrt.f32 %v1832_v59 }
 0xb3a   :  { %v2462_v60 = vpop.eup %2461 }
 0xb3b   :  { %v1835_v62 = vmul.f32 %v2462_v60, %v1819_v53 }
 0xb3c   :  { %v2464_v63 = vpop.eup %2463 }
 0xb3d   :  { %v1843_v1 = vmul.f32 %v2065_v61, %v1835_v62  ;;  %v1836_v2 = vmul.f32 %v2464_v63, %v1820_v48 }
 0xb3f   :  { %v1851_v3 = vadd.f32 %v2066_v0, %v1843_v1  ;;  %v1844_v4 = vmul.f32 %v2065_v61, %v1836_v2 }
 0xb41   :  { %v1852_v5 = vadd.f32 %v2066_v0, %v1844_v4  ;;  %v1853_v6 = vadd.f32 %v1851_v3, %v2616_v14 }
 0xb43   :  { %v1854_v7 = vadd.f32 %v1852_v5, %v2624_v18 }
 0xb45   :  { %v1855_v8 = vpack.c.bf16 %v1854_v7, %v1853_v6 }
 0xb47   :  { %2363 = vmatmul.mubr.msk.bf16.vlgmr.msra.gmra.mrb[56].mxu1 %vm239_vm1, %v1855_v8 }
 0xc1a   :  { %v1909_v9 = vpop.f32.mrb[56].mxu1 }
 0xc1b   :  { %1916 = vst [vmem:[%s2973_s17] sm:$0xff] %v1909_v9  ;;  %v2364_v10 = vpop.f32.mrb[57].mxu1 }
 0xc1c   :  { %v1912_v11 = vpop.f32.mrb[58].mxu1 }
 0xc1d   :  { %1917 = vst [vmem:[%s2973_s17 + $0x8] sm:$0xff] %v1912_v11  ;;  %v2365_v12 = vpop.f32.mrb[59].mxu1 }

</bundles_post_ra>
